<compile_context>
chip_gen: v5e
topology: v5e:2x2
jax: 0.10.0
libtpu: 0.0.40
codegen_flags: <defaults>
</compile_context>

<pallas_src>
import jax
import jax.numpy as jnp
from jax.experimental import pallas as pl
from jax.experimental.pallas import tpu as pltpu


def _round_up(n, m):
    return pl.cdiv(n, m) * m


def _autoencoder_kernel(x_ref, we_ref, be_ref, wd_ref, bd_ref, o_ref):
    # x: (TM, D) compute_dtype; we: (D, Hp); be: (1, Hp) f32; wd: (Hp, D); bd: (1, D) f32
    we = we_ref[...]
    wd = wd_ref[...]
    # --- encoder: Linear (MXU, f32 accumulate) + bias + ReLU in f32 ---
    h = jnp.dot(x_ref[...], we, preferred_element_type=jnp.float32)
    h = jnp.maximum(h + be_ref[...], 0.0)
    # --- decoder: Linear (MXU, f32 accumulate) + bias ---
    y = jnp.dot(h.astype(wd.dtype), wd, preferred_element_type=jnp.float32)
    o_ref[...] = (y + bd_ref[...]).astype(o_ref.dtype)


def _vmem_footprint_bytes(tm, d, hp, in_itemsize, out_itemsize):
    # Double-buffered activation tiles + (conservatively double-buffered) resident
    # weights + biases.
    x_bytes = 2 * tm * d * in_itemsize
    o_bytes = 2 * tm * d * out_itemsize
    w_bytes = 2 * (d * hp + hp * d) * in_itemsize
    b_bytes = 2 * (hp + d) * 4
    return x_bytes + o_bytes + w_bytes + b_bytes


def _pick_tm(batch, d, hp, in_itemsize, out_itemsize,
             budget_bytes=40 * 1024 * 1024, tm_max=512):
    """Largest power-of-two tile (rows) that fits the VMEM budget (sized for v7x)."""
    tm = tm_max
    while tm > 8 and _vmem_footprint_bytes(tm, d, hp, in_itemsize, out_itemsize) > budget_bytes:
        tm //= 2
    # Don't tile wider than the (sublane-padded) batch actually needs.
    return min(tm, max(8, _round_up(batch, 8)))


def autoencoder_forward(x, w_enc, b_enc, w_dec, b_dec, *, compute_dtype=jnp.float32):
    """x: (B, S, C) float32 -> (B, S, C) float32.

    compute_dtype: dtype fed to the MXU (jnp.float32 or jnp.bfloat16). Accumulation,
    bias add and ReLU always happen in float32.
    """
    B, S, C = x.shape
    D = S * C
    H = w_enc.shape[1]

    out_dtype = x.dtype
    in_itemsize = jnp.dtype(compute_dtype).itemsize
    out_itemsize = jnp.dtype(out_dtype).itemsize

    # Lane-dense hidden dim (zero-padding is exact: padded hidden units are
    # ReLU(0*x + 0) = 0 and multiply zero decoder rows).
    Hp = _round_up(H, 128)

    # Tile the batch; pad rows with zeros (sliced off afterwards).
    TM = _pick_tm(B, D, Hp, in_itemsize, out_itemsize)
    Bp = _round_up(B, TM)
    grid = (Bp // TM,)

    x2d = x.reshape(B, D)
    if Bp != B:
        x2d = jnp.pad(x2d, ((0, Bp - B), (0, 0)))
    x2d = x2d.astype(compute_dtype)

    we = w_enc.astype(compute_dtype)
    wd = w_dec.astype(compute_dtype)
    be = b_enc.reshape(1, H).astype(jnp.float32)
    bd = b_dec.reshape(1, D).astype(jnp.float32)
    if Hp != H:
        we = jnp.pad(we, ((0, 0), (0, Hp - H)))
        be = jnp.pad(be, ((0, 0), (0, Hp - H)))
        wd = jnp.pad(wd, ((0, Hp - H), (0, 0)))

    # Advisory cost estimate for XLA's scheduler.
    flops = 4 * Bp * D * Hp  # two matmuls, 2*M*K*N each
    bytes_accessed = (Bp * D * in_itemsize          # x
                      + 2 * D * Hp * in_itemsize    # both weight matrices
                      + (Hp + D) * 4                # biases
                      + Bp * D * out_itemsize)      # output
    cost = pl.CostEstimate(flops=flops, transcendentals=0,
                           bytes_accessed=bytes_accessed)

    # Explicit VMEM budget (default scoped limit can be well below what the tiles
    # need; keep the cap <= v7x's 64 MiB physical VMEM).
    needed = _vmem_footprint_bytes(TM, D, Hp, in_itemsize, out_itemsize)
    vmem_limit = int(min(max(32 * 1024 * 1024, needed + 8 * 1024 * 1024),
                         64 * 1024 * 1024))

    # TODO(synk): if D*Hp weights ever exceed the VMEM budget, add a K-tiling grid
    # axis with a pl.when-initialized f32 accumulator; not needed at these sizes.
    out2d = pl.pallas_call(
        _autoencoder_kernel,
        out_shape=jax.ShapeDtypeStruct((Bp, D), out_dtype),
        grid=grid,
        in_specs=[
            pl.BlockSpec((TM, D), lambda i: (i, 0)),   # x tile (pipelined)
            pl.BlockSpec((D, Hp), lambda i: (0, 0)),   # encoder W (resident)
            pl.BlockSpec((1, Hp), lambda i: (0, 0)),   # encoder b (resident)
            pl.BlockSpec((Hp, D), lambda i: (0, 0)),   # decoder W (resident)
            pl.BlockSpec((1, D), lambda i: (0, 0)),    # decoder b (resident)
        ],
        out_specs=pl.BlockSpec((TM, D), lambda i: (i, 0)),
        compiler_params=pltpu.CompilerParams(
            dimension_semantics=("parallel",),         # megacore-shard the batch axis
            vmem_limit_bytes=vmem_limit,
        ),
        cost_estimate=cost,
    )(x2d, we, be, wd, bd)

    return out2d[:B].reshape(B, S, C)


def init_params(key, d_in, hidden):
    """Deterministic parameter init (matches nn.Linear shapes, stored transposed)."""
    k1, k2, k3, k4 = jax.random.split(key, 4)
    scale_e = 1.0 / jnp.sqrt(d_in)
    scale_d = 1.0 / jnp.sqrt(hidden)
    w_enc = jax.random.uniform(k1, (d_in, hidden), jnp.float32, -scale_e, scale_e)
    b_enc = jax.random.uniform(k2, (1, hidden), jnp.float32, -scale_e, scale_e)
    w_dec = jax.random.uniform(k3, (hidden, d_in), jnp.float32, -scale_d, scale_d)
    b_dec = jax.random.uniform(k4, (1, d_in), jnp.float32, -scale_d, scale_d)
    return w_enc, b_enc, w_dec, b_dec


if __name__ == "__main__":
    # Small shapes consistent with the module's (batch, seq_len, channels) contract.
    B, S, C = 2, 16, 8          # D = 128 (lane-aligned), hidden = 32 (padded to 128)
    D, H = S * C, 32

    key = jax.random.PRNGKey(0)
    kx, kp = jax.random.split(key)
    x = jax.random.normal(kx, (B, S, C), dtype=jnp.float32)
    w_enc, b_enc, w_dec, b_dec = init_params(kp, D, H)

    # --- f32 path (matches PyTorch default numerics) ---
    out = autoencoder_forward(x, w_enc, b_enc, w_dec, b_dec, compute_dtype=jnp.float32)
    out = jax.block_until_ready(out)
    ref = (jnp.maximum(x.reshape(B, D) @ w_enc + b_enc, 0.0) @ w_dec + b_dec).reshape(B, S, C)
    assert out.shape == (B, S, C)
    assert jnp.allclose(out, ref, atol=1e-5, rtol=1e-5)

    # --- bf16 MXU path (perf path on v5e/v6e/v7x): bf16 matmul inputs, f32 accumulate ---
    out_bf16 = autoencoder_forward(x, w_enc, b_enc, w_dec, b_dec, compute_dtype=jnp.bfloat16)
    out_bf16 = jax.block_until_ready(out_bf16)
    xb = x.reshape(B, D).astype(jnp.bfloat16)
    hb = jnp.maximum(
        jnp.dot(xb, w_enc.astype(jnp.bfloat16), preferred_element_type=jnp.float32) + b_enc,
        0.0)
    ref_b = (jnp.dot(hb.astype(jnp.bfloat16), w_dec.astype(jnp.bfloat16),
                     preferred_element_type=jnp.float32) + b_dec).reshape(B, S, C)
    assert out_bf16.shape == (B, S, C)
    assert jnp.allclose(out_bf16, ref_b, atol=1e-2, rtol=1e-2)

    # TODO(synk): build() is abstract in BaseAutoencoder; the concrete encoder/decoder
    # here is a minimal dense autoencoder matching forward() semantics. Training loop,
    # noise augmentation, cropping, windowing and plotting are host-side utilities,
    # not part of forward().
    print("KERNEL_OK")
</pallas_src>

<mosaic_0001>
module attributes {stable_mosaic.version = 11 : i64} {
  func.func @_autoencoder_kernel(%arg0: i32, %arg1: memref<8x128xf32, #tpu.memory_space<vmem>>, %arg2: memref<128x128xf32, #tpu.memory_space<vmem>>, %arg3: memref<1x128xf32, #tpu.memory_space<vmem>>, %arg4: memref<128x128xf32, #tpu.memory_space<vmem>>, %arg5: memref<1x128xf32, #tpu.memory_space<vmem>>, %arg6: memref<8x128xf32, #tpu.memory_space<vmem>>) attributes {dimension_semantics = [#tpu.dimension_semantics<parallel>], iteration_bounds = array<i64: 1>, scalar_prefetch = 0 : i64, scratch_operands = 0 : i64, tpu.core_type = #tpu.core_type<tc>, window_params = [{transform_indices = @transform_0, window_bounds = array<i64: 8, 128>}, {pipeline_mode = #tpu.pipeline_mode<synchronous>, transform_indices = @transform_1, window_bounds = array<i64: 128, 128>}, {pipeline_mode = #tpu.pipeline_mode<synchronous>, transform_indices = @transform_2, window_bounds = array<i64: 1, 128>}, {pipeline_mode = #tpu.pipeline_mode<synchronous>, transform_indices = @transform_3, window_bounds = array<i64: 128, 128>}, {pipeline_mode = #tpu.pipeline_mode<synchronous>, transform_indices = @transform_4, window_bounds = array<i64: 1, 128>}, {transform_indices = @transform_5, window_bounds = array<i64: 8, 128>}]} {
    %c0 = arith.constant 0 : index
    %c0_0 = arith.constant 0 : index
    %0 = vector.load %arg2[%c0, %c0_0] : memref<128x128xf32, #tpu.memory_space<vmem>>, vector<128x128xf32>
    %c0_1 = arith.constant 0 : index
    %c0_2 = arith.constant 0 : index
    %1 = vector.load %arg4[%c0_1, %c0_2] : memref<128x128xf32, #tpu.memory_space<vmem>>, vector<128x128xf32>
    %c0_3 = arith.constant 0 : index
    %c0_4 = arith.constant 0 : index
    %2 = vector.load %arg1[%c0_3, %c0_4] : memref<8x128xf32, #tpu.memory_space<vmem>>, vector<8x128xf32>
    %cst = arith.constant dense<0.000000e+00> : vector<8x128xf32>
    %3 = tpu.matmul %2, %0, %cst {dimension_numbers = #tpu.dot_dimension_numbers<[1], [0], [0], [1], [0, 0, 1, 1], [], []>} : vector<8x128xf32>, vector<128x128xf32>, vector<8x128xf32> -> vector<8x128xf32>
    %c0_5 = arith.constant 0 : index
    %c0_6 = arith.constant 0 : index
    %4 = vector.load %arg3[%c0_5, %c0_6] : memref<1x128xf32, #tpu.memory_space<vmem>>, vector<1x128xf32>
    %5 = vector.broadcast %4 : vector<1x128xf32> to vector<8x128xf32>
    %6 = arith.addf %3, %5 : vector<8x128xf32>
    %cst_7 = arith.constant 0.000000e+00 : f32
    %7 = vector.broadcast %cst_7 : f32 to vector<8x128xf32>
    %8 = arith.maximumf %6, %7 : vector<8x128xf32>
    %cst_8 = arith.constant dense<0.000000e+00> : vector<8x128xf32>
    %9 = tpu.matmul %8, %1, %cst_8 {dimension_numbers = #tpu.dot_dimension_numbers<[1], [0], [0], [1], [0, 0, 1, 1], [], []>} : vector<8x128xf32>, vector<128x128xf32>, vector<8x128xf32> -> vector<8x128xf32>
    %c0_9 = arith.constant 0 : index
    %c0_10 = arith.constant 0 : index
    %10 = vector.load %arg5[%c0_9, %c0_10] : memref<1x128xf32, #tpu.memory_space<vmem>>, vector<1x128xf32>
    %11 = vector.broadcast %10 : vector<1x128xf32> to vector<8x128xf32>
    %12 = arith.addf %9, %11 : vector<8x128xf32>
    %c0_11 = arith.constant 0 : index
    %c0_12 = arith.constant 0 : index
    %13 = vector.load %arg6[%c0_11, %c0_12] : memref<8x128xf32, #tpu.memory_space<vmem>>, vector<8x128xf32>
    tpu.vector_store %arg6[%c0_11, %c0_12], %12 {strides = array<i32>} : memref<8x128xf32, #tpu.memory_space<vmem>>, vector<8x128xf32>,
    return
  }
  func.func @transform_0(%arg0: i32) -> (i32, i32) {
    %c0_i32 = arith.constant 0 : i32
    %c0_i32_0 = arith.constant 0 : i32
    return %arg0, %c0_i32 : i32, i32
  }
  func.func @transform_1(%arg0: i32) -> (i32, i32) {
    %c0_i32 = arith.constant 0 : i32
    %c0_i32_0 = arith.constant 0 : i32
    %c0_i32_1 = arith.constant 0 : i32
    return %c0_i32, %c0_i32_0 : i32, i32
  }
  func.func @transform_2(%arg0: i32) -> (i32, i32) {
    %c0_i32 = arith.constant 0 : i32
    %c0_i32_0 = arith.constant 0 : i32
    %c0_i32_1 = arith.constant 0 : i32
    return %c0_i32, %c0_i32_0 : i32, i32
  }
  func.func @transform_3(%arg0: i32) -> (i32, i32) {
    %c0_i32 = arith.constant 0 : i32
    %c0_i32_0 = arith.constant 0 : i32
    %c0_i32_1 = arith.constant 0 : i32
    return %c0_i32, %c0_i32_0 : i32, i32
  }
  func.func @transform_4(%arg0: i32) -> (i32, i32) {
    %c0_i32 = arith.constant 0 : i32
    %c0_i32_0 = arith.constant 0 : i32
    %c0_i32_1 = arith.constant 0 : i32
    return %c0_i32, %c0_i32_0 : i32, i32
  }
  func.func @transform_5(%arg0: i32) -> (i32, i32) {
    %c0_i32 = arith.constant 0 : i32
    %c0_i32_0 = arith.constant 0 : i32
    return %arg0, %c0_i32 : i32, i32
  }
}

</mosaic_0001>

<bundles_post_ra>
// kernel: tpu_custom_call.1
= control target key start
LH: loop header
LB: loop body
LE: loop exit
PB: predicated region body
PF: predicated region fallthrough
CT: control target
= control target key end

     0   :  { %10 = vsyncpa [#allocation3], 0  ;;  %s331_s0 = inlined_call_operand.hbm [shape: f32[8,128], index: 0, kind: input, shape index: {}]   ;;  %s332_s1 = inlined_call_operand.hbm [shape: f32[128,128], index: 1, kind: input, shape index: {}]   ;;  %s333_s2 = inlined_call_operand.vmem [shape: f32[1,128], index: 2, kind: input, shape index: {}]   ;;  %s334_s3 = inlined_call_operand.hbm [shape: f32[128,128], index: 3, kind: input, shape index: {}]   ;;  %s335_s4 = inlined_call_operand.vmem [shape: f32[1,128], index: 4, kind: input, shape index: {}]   ;;  %s336_s5 = inlined_call_operand.hbm [shape: f32[8,128], index: 5, kind: output, shape index: {}]  }
   0x1   :  { %11 = vsyncpa [#allocation6], 0  ;;  %s28_s20 = sshll.u32 %s332_s1, 4  ;;  %s29_s20 = int_to_ptr.hbm [resolvable:$true] %s28_s20 }
   0x2   :  { %12 = vsyncpa [#allocation4], 0  ;;  %s277_s21 = smov [#allocation5]   ;;  %s18_s25 = sshll.u32 %s331_s0, 4  ;;  %s19_s25 = int_to_ptr.hbm [resolvable:$true] %s18_s25 }
   0x3   :  { %s30_s22 = sshll.u32 %s277_s21, 4  ;;  %s278_s26 = smov 128   ;;  %s31_s22 = int_to_ptr.vmem [resolvable:$true] %s30_s22 }
   0x4   :  { %s279_s27 = smov 8   ;;  %s280_s28 = smov [#allocation2]  }
   0x5   :  { %36 = dma.hbm_to_vmem [thread:$0]  %s29_s20, 2048, %s31_s22, [#allocation6], %s278_s26, %s278_s26, %s279_s27  }
   0x6   :  { %s20_s29 = sshll.u32 %s280_s28, 4  ;;  %s43_s7 = sshll.u32 %s334_s3, 4  ;;  %s21_s29 = int_to_ptr.vmem [resolvable:$true] %s20_s29  ;;  %s44_s7 = int_to_ptr.hbm [resolvable:$true] %s43_s7 }
   0x7   :  { %23 = dma.hbm_to_vmem [thread:$0]  %s19_s25, 128, %s21_s29, [#allocation3]  }
   0x8   :  { %s281_s1 = smov [#allocation7]  }
   0x9   :  { %s45_s8 = sshll.u32 %s281_s1, 4  ;;  %s46_s8 = int_to_ptr.vmem [resolvable:$true] %s45_s8 }
   0xa   :  { %51 = dma.hbm_to_vmem [thread:$0]  %s44_s7, 2048, %s46_s8, [#allocation6], %s278_s26, %s278_s26, %s279_s27  }
   0xb   :  { %271 = dma.done.wait [#allocation3], 128  }
   0xc   :  { %272 = vsyncadd [#allocation3], 4294967168 }
   0xd   :  { %273 = dma.done.wait [#allocation6], 4096  }
   0xe   :  { %274 = vsyncadd [#allocation6], 4294963200  ;;  %v81_v0 = vld [vmem:[#allocation5 + $0x78] sm:$0xff]  ;;  %v80_v1 = vld [vmem:[#allocation5 + $0x70] sm:$0xff]  ;;  %s282_s11 = smov [#allocation8]   ;;  %s156_s15 = sshll.u32 %s336_s5, 4  ;;  %s157_s15 = int_to_ptr.hbm [resolvable:$true] %s156_s15 }
   0xf   :  { %103 = vmatpush.msra.mxu0 %v81_v0  ;;  %v79_v2 = vld [vmem:[#allocation5 + $0x68] sm:$0xff]  ;;  %v78_v3 = vld [vmem:[#allocation5 + $0x60] sm:$0xff]  ;;  %v97_v4 = vld [vmem:[#allocation7 + $0x78] sm:$0xff]  ;;  %s154_s12 = sshll.u32 %s282_s11, 4  ;;  %s155_s12 = int_to_ptr.vmem [resolvable:$true] %s154_s12 }
  0x10   :  { %v77_v5 = vld [vmem:[#allocation5 + $0x58] sm:$0xff]  ;;  %128 = vmatpush.msra.mxu1 %v97_v4  ;;  %v96_v6 = vld [vmem:[#allocation7 + $0x70] sm:$0xff]  ;;  %v95_v7 = vld [vmem:[#allocation7 + $0x68] sm:$0xff] }
  0x11   :  { %104 = vmatpush.msra.mxu0 %v80_v1  ;;  %v76_v8 = vld [vmem:[#allocation5 + $0x50] sm:$0xff]  ;;  %v94_v9 = vld [vmem:[#allocation7 + $0x60] sm:$0xff]  ;;  %v75_v10 = vld [vmem:[#allocation5 + $0x48] sm:$0xff] }
  0x12   :  { %129 = vmatpush.msra.mxu1 %v96_v6  ;;  %v93_v11 = vld [vmem:[#allocation7 + $0x58] sm:$0xff]  ;;  %v74_v12 = vld [vmem:[#allocation5 + $0x40] sm:$0xff]  ;;  %v92_v13 = vld [vmem:[#allocation7 + $0x50] sm:$0xff] }
  0x13   :  { %105 = vmatpush.msra.mxu0 %v79_v2  ;;  %v73_v14 = vld [vmem:[#allocation5 + $0x38] sm:$0xff]  ;;  %v91_v15 = vld [vmem:[#allocation7 + $0x48] sm:$0xff]  ;;  %v72_v16 = vld [vmem:[#allocation5 + $0x30] sm:$0xff] }
  0x14   :  { %130 = vmatpush.msra.mxu1 %v95_v7  ;;  %v90_v17 = vld [vmem:[#allocation7 + $0x40] sm:$0xff]  ;;  %v71_v18 = vld [vmem:[#allocation5 + $0x28] sm:$0xff]  ;;  %v89_v19 = vld [vmem:[#allocation7 + $0x38] sm:$0xff] }
  0x15   :  { %106 = vmatpush.msra.mxu0 %v78_v3  ;;  %v70_v20 = vld [vmem:[#allocation5 + $0x20] sm:$0xff]  ;;  %v88_v21 = vld [vmem:[#allocation7 + $0x30] sm:$0xff]  ;;  %v69_v22 = vld [vmem:[#allocation5 + $0x18] sm:$0xff] }
  0x16   :  { %131 = vmatpush.msra.mxu1 %v94_v9  ;;  %v87_v23 = vld [vmem:[#allocation7 + $0x28] sm:$0xff]  ;;  %v68_v24 = vld [vmem:[#allocation5 + $0x10] sm:$0xff]  ;;  %v86_v25 = vld [vmem:[#allocation7 + $0x20] sm:$0xff] }
  0x17   :  { %107 = vmatpush.msra.mxu0 %v77_v5  ;;  %v67_v26 = vld [vmem:[#allocation5 + $0x8] sm:$0xff]  ;;  %v85_v27 = vld [vmem:[#allocation7 + $0x18] sm:$0xff]  ;;  %v66_v28 = vld [vmem:[#allocation5] sm:$0xff] }
  0x18   :  { %132 = vmatpush.msra.mxu1 %v93_v11  ;;  %v98_v29 = vld [vmem:[#allocation2] sm:$0xff]  ;;  %v84_v30 = vld [vmem:[#allocation7 + $0x10] sm:$0xff]  ;;  %v83_v31 = vld [vmem:[#allocation7 + $0x8] sm:$0xff] }
  0x19   :  { %108 = vmatpush.msra.mxu0 %v76_v8  ;;  %v82_v32 = vld [vmem:[#allocation7] sm:$0xff]  ;;  %v173_v33 = vld [vmem:[%s333_s2] ss:$0 sm:$0xff] }
  0x1a   :  { %133 = vmatpush.msra.mxu1 %v92_v13  ;;  %v174_v37 = vld [vmem:[%s335_s4] ss:$0 sm:$0xff] }
  0x1b   :  { %109 = vmatpush.msra.mxu0 %v75_v10 }
  0x1c   :  { %134 = vmatpush.msra.mxu1 %v91_v15 }
  0x1d   :  { %110 = vmatpush.msra.mxu0 %v74_v12 }
  0x1e   :  { %135 = vmatpush.msra.mxu1 %v90_v17 }
  0x1f   :  { %111 = vmatpush.msra.mxu0 %v73_v14 }
  0x20   :  { %136 = vmatpush.msra.mxu1 %v89_v19 }
  0x21   :  { %112 = vmatpush.msra.mxu0 %v72_v16 }
  0x22   :  { %137 = vmatpush.msra.mxu1 %v88_v21 }
  0x23   :  { %113 = vmatpush.msra.mxu0 %v71_v18 }
  0x24   :  { %138 = vmatpush.msra.mxu1 %v87_v23 }
  0x25   :  { %114 = vmatpush.msra.mxu0 %v70_v20 }
  0x26   :  { %139 = vmatpush.msra.mxu1 %v86_v25 }
  0x27   :  { %115 = vmatpush.msra.mxu0 %v69_v22 }
  0x28   :  { %140 = vmatpush.msra.mxu1 %v85_v27 }
  0x29   :  { %116 = vmatpush.msra.mxu0 %v68_v24 }
  0x2a   :  { %141 = vmatpush.msra.mxu1 %v84_v30 }
  0x2b   :  { %117 = vmatpush.msra.mxu0 %v67_v26 }
  0x2c   :  { %142 = vmatpush.msra.mxu1 %v83_v31 }
  0x2d   :  { %118 = vmatpush.msra.mxu0 %v66_v28 }
  0x2e   :  { %119 = vmatmul.f32.vlgmr.msra.gmra.mxu0 %v98_v29  ;;  %143 = vmatpush.msra.mxu1 %v82_v32 }
  0xab   :  { %v120_v34 = vpop.f32.mrf.mxu0 }
  0xac   :  { %v121_v35 = vadd.f32 %v173_v33, %v120_v34 }
  0xae   :  { %v123_v36 = vmax.f32 %v121_v35, 0.0 }
  0xb0   :  { %144 = vmatmul.f32.vlgmr.msra.gmra.mxu1 %v123_v36 }
 0x12d   :  { %v145_v38 = vpop.f32.mrf.mxu1 }
 0x12e   :  { %v146_v39 = vadd.f32 %v174_v37, %v145_v38 }
 0x130   :  { %148 = vst [vmem:[#allocation8] sm:$0xff] %v146_v39 }
 0x131   :  { %159 = dma.vmem_to_hbm [thread:$0]  %s155_s12, 128, %s157_s15, [#allocation4]  }
 0x132   :  { %275 = dma.done.wait [#allocation4], 128  }
 0x133   :  { %276 = vsyncadd [#allocation4], 4294967168 }
 0x134   :  { %164 = vsyncpa [#allocation3], 1 }
 0x135   :  { %165 = vsyncpa [#allocation6], 1 }
 0x136   :  { %166 = vsyncpa [#allocation4], 1 }

</bundles_post_ra>
